<compile_context>
chip_gen: v7x
topology: tpu7x:2x2x1
jax: 0.10.0
libtpu: 0.0.40
codegen_flags: <defaults>
</compile_context>

<pallas_src>
import functools

import jax
import jax.numpy as jnp
from jax.experimental import pallas as pl
from jax.experimental.pallas import tpu as pltpu


def _round_up(a: int, b: int) -> int:
    return ((a + b - 1) // b) * b


def _ffn_kernel(x_ref, w1_ref, b1_ref, w2_ref, b2_ref, o_ref, acc_ref):
    # x_ref:  (block_m, d_model_p)            compute dtype (bf16/f32)
    # w1_ref: (d_model_p, block_ff)           compute dtype
    # b1_ref: (1, block_ff)                   f32
    # w2_ref: (block_ff, d_model_p)           compute dtype
    # b2_ref: (1, d_model_p)                  f32
    # o_ref:  (block_m, d_model_p)            output dtype
    # acc_ref:(block_m, d_model_p)            f32 accumulator (resident across k)
    k = pl.program_id(1)

    @pl.when(k == 0)
    def _init():
        # Fold the b2 bias into the accumulator init.
        acc_ref[...] = jnp.broadcast_to(
            b2_ref[...].astype(jnp.float32), acc_ref.shape)

    h = jnp.dot(x_ref[...], w1_ref[...], preferred_element_type=jnp.float32)
    h = h + b1_ref[...].astype(jnp.float32)
    h = jnp.maximum(h, 0.0)  # ReLU
    # TODO(synk): dropout(h) skipped — inference mode (identity).
    acc_ref[...] += jnp.dot(h.astype(w2_ref.dtype), w2_ref[...],
                            preferred_element_type=jnp.float32)

    @pl.when(k == pl.num_programs(1) - 1)
    def _finalize():
        o_ref[...] = acc_ref[...].astype(o_ref.dtype)


@functools.partial(
    jax.jit,
    static_argnames=("block_m", "block_ff", "compute_dtype", "vmem_limit_bytes"))
def position_wise_feed_forward(x, w1, b1, w2, b2, *,
                               block_m: int = 512,
                               block_ff: int = 512,
                               compute_dtype=jnp.bfloat16,
                               vmem_limit_bytes: int = 48 * 1024 * 1024):
    """x: (batch, seq, d_model). Weights stored as (in, out) == torch weight.T."""
    B, S, d_model = x.shape
    d_ff = w1.shape[1]
    M = B * S
    out_dtype = x.dtype

    # ---- tile-size selection (lane-dense, sublane-aligned, VMEM-bounded) ----
    d_model_p = _round_up(d_model, 128)
    block_ff = _round_up(block_ff, 128)
    block_ff = min(block_ff, _round_up(d_ff, 128))
    d_ff_p = _round_up(d_ff, block_ff)          # padded cols are exact zeros
    block_m = _round_up(block_m, 8)
    block_m = min(block_m, _round_up(M, 8))     # clamp for small problems

    # ---- cast to MXU-native compute dtype and zero-pad feature dims ----
    x2d = x.reshape(M, d_model).astype(compute_dtype)
    x2d = jnp.pad(x2d, ((0, 0), (0, d_model_p - d_model)))
    w1_p = jnp.pad(w1.astype(compute_dtype),
                   ((0, d_model_p - d_model), (0, d_ff_p - d_ff)))
    w2_p = jnp.pad(w2.astype(compute_dtype),
                   ((0, d_ff_p - d_ff), (0, d_model_p - d_model)))
    b1_p = jnp.pad(b1.astype(jnp.float32), (0, d_ff_p - d_ff)).reshape(1, d_ff_p)
    b2_p = jnp.pad(b2.astype(jnp.float32),
                   (0, d_model_p - d_model)).reshape(1, d_model_p)

    grid = (pl.cdiv(M, block_m), d_ff_p // block_ff)

    out2d = pl.pallas_call(
        _ffn_kernel,
        out_shape=jax.ShapeDtypeStruct((M, d_model_p), out_dtype),
        grid_spec=pltpu.PrefetchScalarGridSpec(
            num_scalar_prefetch=0,
            grid=grid,
            in_specs=[
                pl.BlockSpec((block_m, d_model_p), lambda i, k: (i, 0)),   # x
                pl.BlockSpec((d_model_p, block_ff), lambda i, k: (0, k)),  # w1
                pl.BlockSpec((1, block_ff), lambda i, k: (0, k)),          # b1
                pl.BlockSpec((block_ff, d_model_p), lambda i, k: (k, 0)),  # w2
                pl.BlockSpec((1, d_model_p), lambda i, k: (0, 0)),         # b2
            ],
            out_specs=pl.BlockSpec((block_m, d_model_p), lambda i, k: (i, 0)),
            scratch_shapes=[pltpu.VMEM((block_m, d_model_p), jnp.float32)],
        ),
        compiler_params=pltpu.CompilerParams(
            dimension_semantics=("parallel", "arbitrary"),
            vmem_limit_bytes=vmem_limit_bytes,
        ),
    )(x2d, w1_p, b1_p, w2_p, b2_p)

    return out2d[:, :d_model].reshape(B, S, d_model)


if __name__ == "__main__":
    # Small, module-consistent shapes.
    batch, seq, d_model, d_ff = 2, 8, 32, 64
    dropout = 0.1  # unused at inference time

    key = jax.random.PRNGKey(0)
    kx, kw1, kb1, kw2, kb2 = jax.random.split(key, 5)

    x = jax.random.normal(kx, (batch, seq, d_model), dtype=jnp.float32)
    # Weights stored as (in, out) == PyTorch nn.Linear weight.T
    w1 = jax.random.normal(kw1, (d_model, d_ff), dtype=jnp.float32) * 0.1
    b1 = jax.random.normal(kb1, (d_ff,), dtype=jnp.float32) * 0.1
    w2 = jax.random.normal(kw2, (d_ff, d_model), dtype=jnp.float32) * 0.1
    b2 = jax.random.normal(kb2, (d_model,), dtype=jnp.float32) * 0.1

    # Reference (same math as the PyTorch forward in eval mode).
    ref = jnp.maximum(x @ w1 + b1, 0.0) @ w2 + b2

    # f32 compute path: bit-for-bit-ish check against the f32 reference.
    out_f32 = position_wise_feed_forward(
        x, w1, b1, w2, b2, compute_dtype=jnp.float32)
    jax.block_until_ready(out_f32)
    assert out_f32.shape == (batch, seq, d_model)
    assert jnp.allclose(out_f32, ref, atol=1e-5, rtol=1e-5)

    # bf16 compute path (production default: bf16 operands, f32 accumulation).
    out_bf16 = position_wise_feed_forward(x, w1, b1, w2, b2)
    jax.block_until_ready(out_bf16)
    assert out_bf16.shape == (batch, seq, d_model)
    assert jnp.allclose(out_bf16, ref, atol=5e-2, rtol=5e-2)

    print("KERNEL_OK")
</pallas_src>

<mosaic_0001>
module attributes {stable_mosaic.version = 11 : i64} {
  func.func @_ffn_kernel(%arg0: i32, %arg1: i32, %arg2: memref<16x128xf32, #tpu.memory_space<vmem>>, %arg3: memref<128x128xf32, #tpu.memory_space<vmem>>, %arg4: memref<1x128xf32, #tpu.memory_space<vmem>>, %arg5: memref<128x128xf32, #tpu.memory_space<vmem>>, %arg6: memref<1x128xf32, #tpu.memory_space<vmem>>, %arg7: memref<16x128xf32, #tpu.memory_space<vmem>>, %arg8: memref<16x128xf32, #tpu.memory_space<vmem>>) attributes {dimension_semantics = [#tpu.dimension_semantics<parallel>, #tpu.dimension_semantics<arbitrary>], iteration_bounds = array<i64: 1, 1>, scalar_prefetch = 0 : i64, scratch_operands = 1 : i64, tpu.core_type = #tpu.core_type<tc>, window_params = [{transform_indices = @transform_0, window_bounds = array<i64: 16, 128>}, {transform_indices = @transform_1, window_bounds = array<i64: 128, 128>}, {transform_indices = @transform_2, window_bounds = array<i64: 1, 128>}, {transform_indices = @transform_3, window_bounds = array<i64: 128, 128>}, {pipeline_mode = #tpu.pipeline_mode<synchronous>, transform_indices = @transform_4, window_bounds = array<i64: 1, 128>}, {transform_indices = @transform_5, window_bounds = array<i64: 16, 128>}]} {
    %c0_i32 = arith.constant 0 : i32
    %0 = arith.cmpi eq, %arg1, %c0_i32 : i32
    %1 = arith.extui %0 : i1 to i32
    %c0_i32_0 = arith.constant 0 : i32
    %2 = arith.cmpi ne, %1, %c0_i32_0 : i32
    scf.if %2 {
      %c0_16 = arith.constant 0 : index
      %c0_17 = arith.constant 0 : index
      %19 = vector.load %arg6[%c0_16, %c0_17] : memref<1x128xf32, #tpu.memory_space<vmem>>, vector<1x128xf32>
      %20 = vector.shape_cast %19 : vector<1x128xf32> to vector<1x128xf32>
      %21 = vector.broadcast %20 : vector<1x128xf32> to vector<16x128xf32>
      %c0_18 = arith.constant 0 : index
      %c0_19 = arith.constant 0 : index
      %22 = vector.load %arg8[%c0_18, %c0_19] : memref<16x128xf32, #tpu.memory_space<vmem>>, vector<16x128xf32>
      tpu.vector_store %arg8[%c0_18, %c0_19], %21 {strides = array<i32>} : memref<16x128xf32, #tpu.memory_space<vmem>>, vector<16x128xf32>,
    } else {
    }
    %c0 = arith.constant 0 : index
    %c0_1 = arith.constant 0 : index
    %3 = vector.load %arg2[%c0, %c0_1] : memref<16x128xf32, #tpu.memory_space<vmem>>, vector<16x128xf32>
    %c0_2 = arith.constant 0 : index
    %c0_3 = arith.constant 0 : index
    %4 = vector.load %arg3[%c0_2, %c0_3] : memref<128x128xf32, #tpu.memory_space<vmem>>, vector<128x128xf32>
    %cst = arith.constant dense<0.000000e+00> : vector<16x128xf32>
    %5 = tpu.matmul %3, %4, %cst {dimension_numbers = #tpu.dot_dimension_numbers<[1], [0], [0], [1], [0, 0, 1, 1], [], []>} : vector<16x128xf32>, vector<128x128xf32>, vector<16x128xf32> -> vector<16x128xf32>
    %c0_4 = arith.constant 0 : index
    %c0_5 = arith.constant 0 : index
    %6 = vector.load %arg4[%c0_4, %c0_5] : memref<1x128xf32, #tpu.memory_space<vmem>>, vector<1x128xf32>
    %7 = vector.broadcast %6 : vector<1x128xf32> to vector<16x128xf32>
    %8 = arith.addf %5, %7 : vector<16x128xf32>
    %cst_6 = arith.constant 0.000000e+00 : f32
    %9 = vector.broadcast %cst_6 : f32 to vector<16x128xf32>
    %10 = arith.maximumf %8, %9 : vector<16x128xf32>
    %c0_7 = arith.constant 0 : index
    %c0_8 = arith.constant 0 : index
    %11 = vector.load %arg8[%c0_7, %c0_8] : memref<16x128xf32, #tpu.memory_space<vmem>>, vector<16x128xf32>
    %c0_9 = arith.constant 0 : index
    %c0_10 = arith.constant 0 : index
    %12 = vector.load %arg5[%c0_9, %c0_10] : memref<128x128xf32, #tpu.memory_space<vmem>>, vector<128x128xf32>
    %cst_11 = arith.constant dense<0.000000e+00> : vector<16x128xf32>
    %13 = tpu.matmul %10, %12, %cst_11 {dimension_numbers = #tpu.dot_dimension_numbers<[1], [0], [0], [1], [0, 0, 1, 1], [], []>} : vector<16x128xf32>, vector<128x128xf32>, vector<16x128xf32> -> vector<16x128xf32>
    %14 = arith.addf %11, %13 : vector<16x128xf32>
    %c0_12 = arith.constant 0 : index
    %c0_13 = arith.constant 0 : index
    %15 = vector.load %arg8[%c0_12, %c0_13] : memref<16x128xf32, #tpu.memory_space<vmem>>, vector<16x128xf32>
    tpu.vector_store %arg8[%c0_12, %c0_13], %14 {strides = array<i32>} : memref<16x128xf32, #tpu.memory_space<vmem>>, vector<16x128xf32>,
    %c0_i32_14 = arith.constant 0 : i32
    %16 = arith.cmpi eq, %arg1, %c0_i32_14 : i32
    %17 = arith.extui %16 : i1 to i32
    %c0_i32_15 = arith.constant 0 : i32
    %18 = arith.cmpi ne, %17, %c0_i32_15 : i32
    scf.if %18 {
      %c0_16 = arith.constant 0 : index
      %c0_17 = arith.constant 0 : index
      %19 = vector.load %arg8[%c0_16, %c0_17] : memref<16x128xf32, #tpu.memory_space<vmem>>, vector<16x128xf32>
      %c0_18 = arith.constant 0 : index
      %c0_19 = arith.constant 0 : index
      %20 = vector.load %arg7[%c0_18, %c0_19] : memref<16x128xf32, #tpu.memory_space<vmem>>, vector<16x128xf32>
      tpu.vector_store %arg7[%c0_18, %c0_19], %19 {strides = array<i32>} : memref<16x128xf32, #tpu.memory_space<vmem>>, vector<16x128xf32>,
    } else {
    }
    return
  }
  func.func @transform_0(%arg0: i32, %arg1: i32) -> (i32, i32) {
    %c0_i32 = arith.constant 0 : i32
    %c0_i32_0 = arith.constant 0 : i32
    return %arg0, %c0_i32 : i32, i32
  }
  func.func @transform_1(%arg0: i32, %arg1: i32) -> (i32, i32) {
    %c0_i32 = arith.constant 0 : i32
    %c0_i32_0 = arith.constant 0 : i32
    return %c0_i32, %arg1 : i32, i32
  }
  func.func @transform_2(%arg0: i32, %arg1: i32) -> (i32, i32) {
    %c0_i32 = arith.constant 0 : i32
    %c0_i32_0 = arith.constant 0 : i32
    return %c0_i32, %arg1 : i32, i32
  }
  func.func @transform_3(%arg0: i32, %arg1: i32) -> (i32, i32) {
    %c0_i32 = arith.constant 0 : i32
    %c0_i32_0 = arith.constant 0 : i32
    return %arg1, %c0_i32 : i32, i32
  }
  func.func @transform_4(%arg0: i32, %arg1: i32) -> (i32, i32) {
    %c0_i32 = arith.constant 0 : i32
    %c0_i32_0 = arith.constant 0 : i32
    %c0_i32_1 = arith.constant 0 : i32
    return %c0_i32, %c0_i32_0 : i32, i32
  }
  func.func @transform_5(%arg0: i32, %arg1: i32) -> (i32, i32) {
    %c0_i32 = arith.constant 0 : i32
    %c0_i32_0 = arith.constant 0 : i32
    return %arg0, %c0_i32 : i32, i32
  }
}

</mosaic_0001>

<bundles_post_ra>
// kernel: position_wise_feed_forward.1
= control target key start
LH: loop header
LB: loop body
LE: loop exit
PB: predicated region body
PF: predicated region fallthrough
CT: control target
= control target key end

     0   :  { %s559_s1 = inlined_call_operand.vmem [shape: f32[128,128], index: 1, kind: input, shape index: {}]   ;;  %s560_s0 = inlined_call_operand.vmem [shape: f32[16,128], index: 0, kind: input, shape index: {}]   ;;  %s561_s3 = inlined_call_operand.vmem [shape: f32[128,128], index: 3, kind: input, shape index: {}]   ;;  %s562_s2 = inlined_call_operand.vmem [shape: f32[1,128], index: 2, kind: input, shape index: {}]   ;;  %s563_s4 = inlined_call_operand.vmem [shape: f32[1,128], index: 4, kind: input, shape index: {}]   ;;  %s564_s5 = inlined_call_operand.vmem [shape: f32[16,128], index: 5, kind: output, shape index: {}]  }
   0x1   :  { %v35_v0 = vld [vmem:[%s559_s1] sm:$0xff]  ;;  %v36_v1 = vld [vmem:[%s559_s1 + $0x8] sm:$0xff]  ;;  %v37_v2 = vld [vmem:[%s559_s1 + $0x10] sm:$0xff] }
   0x2   :  { %v351_v3 = vpack.c.bf16 %v36_v1, %v35_v0  ;;  %v38_v4 = vld [vmem:[%s559_s1 + $0x18] sm:$0xff]  ;;  %v39_v6 = vld [vmem:[%s559_s1 + $0x20] sm:$0xff]  ;;  %v40_v7 = vld [vmem:[%s559_s1 + $0x28] sm:$0xff] }
   0x3   :  { %v355_v5 = vpack.c.bf16 %v38_v4, %v37_v2  ;;  %v359_v8 = vpack.c.bf16 %v40_v7, %v39_v6  ;;  %v41_v9 = vld [vmem:[%s559_s1 + $0x30] sm:$0xff]  ;;  %v42_v10 = vld [vmem:[%s559_s1 + $0x38] sm:$0xff]  ;;  %v33_v11 = vld [vmem:[%s560_s0] sm:$0xff] }
   0x4   :  { %352 = vmatprep.subr.bf16.mxu0 %v351_v3  ;;  %313 = vmatprep.mubr.f32.mxu0 %v33_v11  ;;  %v137_v12 = vld [vmem:[%s561_s3] sm:$0xff]  ;;  %v138_v13 = vld [vmem:[%s561_s3 + $0x8] sm:$0xff]  ;;  %v139_v14 = vld [vmem:[%s561_s3 + $0x10] sm:$0xff]  ;;  %v363_v20 = vpack.c.bf16 %v42_v10, %v41_v9 }
   0x5   :  { %354 = vmatpush3.bf16.msra.mxu0 %v351_v3  ;;  %v383_v15 = vpack.c.bf16 %v138_v13, %v137_v12  ;;  %v140_v16 = vld [vmem:[%s561_s3 + $0x18] sm:$0xff]  ;;  %v141_v18 = vld [vmem:[%s561_s3 + $0x20] sm:$0xff]  ;;  %v142_v19 = vld [vmem:[%s561_s3 + $0x28] sm:$0xff] }
   0x6   :  { %356 = vmatprep.subr.bf16.mxu0 %v355_v5  ;;  %v387_v17 = vpack.c.bf16 %v140_v16, %v139_v14  ;;  %v43_v21 = vld [vmem:[%s559_s1 + $0x40] sm:$0xff]  ;;  %v44_v22 = vld [vmem:[%s559_s1 + $0x48] sm:$0xff]  ;;  %v391_v23 = vpack.c.bf16 %v142_v19, %v141_v18  ;;  %v143_v24 = vld [vmem:[%s561_s3 + $0x30] sm:$0xff] }
   0x7   :  { %384 = vmatprep.subr.bf16.mxu1 %v383_v15  ;;  %v144_v25 = vld [vmem:[%s561_s3 + $0x38] sm:$0xff]  ;;  %v367_v26 = vpack.c.bf16 %v44_v22, %v43_v21  ;;  %v45_v27 = vld [vmem:[%s559_s1 + $0x50] sm:$0xff]  ;;  %v145_v30 = vld [vmem:[%s561_s3 + $0x40] sm:$0xff] }
   0x8   :  { %386 = vmatpush3.bf16.msra.mxu1 %v383_v15  ;;  %v46_v28 = vld [vmem:[%s559_s1 + $0x58] sm:$0xff]  ;;  %v395_v29 = vpack.c.bf16 %v144_v25, %v143_v24  ;;  %v146_v31 = vld [vmem:[%s561_s3 + $0x48] sm:$0xff]  ;;  %v47_v33 = vld [vmem:[%s559_s1 + $0x60] sm:$0xff] }
   0x9   :  { %358 = vmatpush3.bf16.msra.mxu0 %v355_v5  ;;  %388 = vmatprep.subr.bf16.mxu1 %v387_v17  ;;  %v371_v32 = vpack.c.bf16 %v46_v28, %v45_v27  ;;  %v48_v34 = vld [vmem:[%s559_s1 + $0x68] sm:$0xff]  ;;  %v399_v35 = vpack.c.bf16 %v146_v31, %v145_v30  ;;  %v147_v36 = vld [vmem:[%s561_s3 + $0x50] sm:$0xff]  ;;  %v148_v37 = vld [vmem:[%s561_s3 + $0x58] sm:$0xff] }
   0xa   :  { %360 = vmatprep.subr.bf16.mxu0 %v359_v8  ;;  %v375_v38 = vpack.c.bf16 %v48_v34, %v47_v33  ;;  %v49_v39 = vld [vmem:[%s559_s1 + $0x70] sm:$0xff]  ;;  %v50_v40 = vld [vmem:[%s559_s1 + $0x78] sm:$0xff]  ;;  %v403_v41 = vpack.c.bf16 %v148_v37, %v147_v36  ;;  %v149_v42 = vld [vmem:[%s561_s3 + $0x60] sm:$0xff] }
   0xb   :  { %v150_v43 = vld [vmem:[%s561_s3 + $0x68] sm:$0xff]  ;;  %v379_v44 = vpack.c.bf16 %v50_v40, %v49_v39  ;;  %v151_v47 = vld [vmem:[%s561_s3 + $0x70] sm:$0xff]  ;;  %v152_v48 = vld [vmem:[%s561_s3 + $0x78] sm:$0xff] }
   0xc   :  { %390 = vmatpush3.bf16.msra.mxu1 %v387_v17  ;;  %v407_v45 = vpack.c.bf16 %v150_v43, %v149_v42  ;;  %v34_v46 = vld [vmem:[%s560_s0 + $0x8] sm:$0xff]  ;;  %v411_v49 = vpack.c.bf16 %v152_v48, %v151_v47  ;;  %v244_v50 = vld [vmem:[%s562_s2] ss:$0 sm:$0xff] }
   0xd   :  { %362 = vmatpush3.bf16.msra.mxu0 %v359_v8  ;;  %392 = vmatprep.subr.bf16.mxu1 %v391_v23  ;;  %v243_v57 = vld [vmem:[%s563_s4] ss:$0 sm:$0xff] }
   0xe   :  { %364 = vmatprep.subr.bf16.mxu0 %v363_v20 }
  0x10   :  { %394 = vmatpush3.bf16.msra.mxu1 %v391_v23 }
  0x11   :  { %366 = vmatpush3.bf16.msra.mxu0 %v363_v20  ;;  %396 = vmatprep.subr.bf16.mxu1 %v395_v29 }
  0x12   :  { %368 = vmatprep.subr.bf16.mxu0 %v367_v26 }
  0x14   :  { %398 = vmatpush3.bf16.msra.mxu1 %v395_v29 }
  0x15   :  { %370 = vmatpush3.bf16.msra.mxu0 %v367_v26  ;;  %400 = vmatprep.subr.bf16.mxu1 %v399_v35 }
  0x16   :  { %372 = vmatprep.subr.bf16.mxu0 %v371_v32 }
  0x18   :  { %402 = vmatpush3.bf16.msra.mxu1 %v399_v35 }
  0x19   :  { %374 = vmatpush3.bf16.msra.mxu0 %v371_v32  ;;  %404 = vmatprep.subr.bf16.mxu1 %v403_v41 }
  0x1a   :  { %376 = vmatprep.subr.bf16.mxu0 %v375_v38 }
  0x1c   :  { %406 = vmatpush3.bf16.msra.mxu1 %v403_v41 }
  0x1d   :  { %378 = vmatpush3.bf16.msra.mxu0 %v375_v38  ;;  %408 = vmatprep.subr.bf16.mxu1 %v407_v45 }
  0x1e   :  { %380 = vmatprep.subr.bf16.mxu0 %v379_v44 }
  0x20   :  { %410 = vmatpush3.bf16.msra.mxu1 %v407_v45 }
  0x21   :  { %382 = vmatpush3.bf16.msra.mxu0 %v379_v44  ;;  %412 = vmatprep.subr.bf16.mxu1 %v411_v49 }
  0x24   :  { %314 = vmatmul.mubr.f32.vlgmr.msra.gmra.mrb[0].mxu0 %v34_v46  ;;  %414 = vmatpush3.bf16.msra.mxu1 %v411_v49 }
  0xf7   :  { %v315_v51 = vpop.f32.mrb[0].mxu0 }
  0xf8   :  { %v130_v52 = vadd.f32 %v315_v51, %v244_v50  ;;  %v124_v53 = vpop.f32.mrb[1].mxu0 }
  0xf9   :  { %v125_v54 = vadd.f32 %v244_v50, %v124_v53 }
  0xfa   :  { %v134_v56 = vmax.f32 %v130_v52, 0.0 }
  0xfb   :  { %v133_v55 = vmax.f32 %v125_v54, 0.0 }
  0xfd   :  { %348 = vmatprep.mubr.f32.mxu1 %v133_v55 }
  0xfe   :  { %349 = vmatmul.mubr.f32.vlgmr.msra.gmra.mrb[0].mxu1 %v134_v56 }
 0x1d1   :  { %v350_v58 = vpop.f32.mrb[0].mxu1 }
 0x1d2   :  { %v229_v59 = vadd.f32 %v350_v58, %v243_v57  ;;  %v219_v60 = vpop.f32.mrb[1].mxu1 }
 0x1d3   :  { %v228_v61 = vadd.f32 %v243_v57, %v219_v60 }
 0x1d4   :  { %238 = vst [vmem:[%s564_s5 + $0x8] sm:$0xff] %v229_v59 }
 0x1d5   :  { %237 = vst [vmem:[%s564_s5] sm:$0xff] %v228_v61 }

</bundles_post_ra>
